<compile_context>
chip_gen: v7x
topology: tpu7x:2x2x1
jax: 0.10.0
libtpu: 0.0.40
codegen_flags: <defaults>
</compile_context>

<pallas_src>
import numpy as np

import jax
import jax.numpy as jnp
from jax import lax
from jax.experimental import pallas as pl
from jax.experimental.pallas import tpu as pltpu

_LANE = 128
_DICE_SMOOTH = 1.0
_MAX_TILE_ROWS = 4096  # 4096 * 128 * 4 B = 2 MiB per f32 input block


def _round_up(x: int, m: int) -> int:
    return ((x + m - 1) // m) * m


def _num_tensorcores() -> int:
    """Best-effort TensorCore count (2 on v7x, 1 on v5e/v6e). Safe fallback 1."""
    try:
        info = pltpu.get_tpu_info()
    except Exception:
        return 1
    for attr in ("num_cores", "core_count", "num_tensorcores", "tensorcore_count"):
        v = getattr(info, attr, None)
        if isinstance(v, int) and v >= 1:
            return v
    return 1


def _make_partial_sums_kernel(tile_rows: int, steps: int, n_valid: int,
                              needs_mask: bool):
    """Build the per-split partial-sum kernel with static config baked in.

    Grid = (num_splits, steps).  Axis 0 is "parallel" (one split per
    TensorCore on v7x), axis 1 is the sequential reduction.  Three (8, 128)
    f32 VMEM accumulators hold per-lane partial sums of:
        bce_acc   : per-element BCE-with-logits
        inter_acc : sigmoid(pred) * target
        denom_acc : sigmoid(pred) + target
    The last step of each split writes an (1, 8, 128) block whose lanes are
        lane0 = sum(bce), lane1 = sum(p*t), lane2 = sum(p)+sum(t).
    """
    n_sub = tile_rows // 8

    def kernel(pred_ref, tgt_ref, out_ref, bce_acc, inter_acc, denom_acc):
        j = pl.program_id(1)

        @pl.when(j == 0)
        def _init():
            bce_acc[...] = jnp.zeros_like(bce_acc)
            inter_acc[...] = jnp.zeros_like(inter_acc)
            denom_acc[...] = jnp.zeros_like(denom_acc)

        x = pred_ref[...].astype(jnp.float32)
        t = tgt_ref[...].astype(jnp.float32)

        # 2 EUP transcendentals per element (tanh + log), no divide/select:
        #   sigmoid(x)        = 0.5 * (1 + tanh(x/2))
        #   log1p(exp(-|x|))  = -log(max(p, 1-p))   (argument >= 0.5, well cond.)
        p = 0.5 * (1.0 + jnp.tanh(0.5 * x))
        log_term = -jnp.log(jnp.maximum(p, 1.0 - p))
        bce = jnp.maximum(x, 0.0) - x * t + log_term
        inter = p * t
        denom = p + t

        if needs_mask:
            # Zero-padding is NOT neutral (bce(0,0)=log2, sigmoid(0)=0.5), so
            # mask padded elements explicitly.  int32 flat index is fine for
            # tensors < ~2.1e9 elements.
            c = pl.program_id(0)
            row_off = (c * steps + j) * tile_rows
            row = lax.broadcasted_iota(jnp.int32, (tile_rows, _LANE), 0) + row_off
            lane = lax.broadcasted_iota(jnp.int32, (tile_rows, _LANE), 1)
            mask = ((row * _LANE + lane) < n_valid).astype(jnp.float32)
            bce = bce * mask
            inter = inter * mask
            denom = denom * mask

        # In-register add-tree into single-vreg accumulators.  The reshape
        # splits the sublane axis exactly on (8, 128) vreg boundaries, so it
        # is layout-free; the reduction over axis 0 is pure VALU adds.
        bce_acc[...] += jnp.sum(bce.reshape(n_sub, 8, _LANE), axis=0)
        inter_acc[...] += jnp.sum(inter.reshape(n_sub, 8, _LANE), axis=0)
        denom_acc[...] += jnp.sum(denom.reshape(n_sub, 8, _LANE), axis=0)

        @pl.when(j == pl.num_programs(1) - 1)
        def _finalize():
            s_bce = jnp.sum(bce_acc[...])
            s_inter = jnp.sum(inter_acc[...])
            s_denom = jnp.sum(denom_acc[...])
            lane = lax.broadcasted_iota(jnp.int32, (1, 8, _LANE), 2)
            vec = jnp.where(
                lane == 0, s_bce,
                jnp.where(lane == 1, s_inter,
                          jnp.where(lane == 2, s_denom, 0.0)),
            )
            out_ref[...] = vec.astype(out_ref.dtype)

    return kernel


def _jax_fallback(pred, target, w_bce, w_dice):
    """Plain-JAX path (same math) for tiny inputs where call overhead wins."""
    x = pred.astype(jnp.float32)
    t = target.astype(jnp.float32)
    bce = jnp.mean(jnp.maximum(x, 0.0) - x * t + jnp.log1p(jnp.exp(-jnp.abs(x))))
    p = jax.nn.sigmoid(x)
    dice = 1.0 - (2.0 * jnp.sum(p * t) + _DICE_SMOOTH) / (
        jnp.sum(p) + jnp.sum(t) + _DICE_SMOOTH
    )
    return (w_bce * bce + w_dice * dice).astype(jnp.float32)


def weighted_sum_combinator(pred, target, weights=(0.7, 0.3), *, use_pallas=None):
    """Weighted sum of [BCE-with-logits, soft Dice] losses (f32 scalar)."""
    if pred.shape != target.shape:
        raise ValueError("pred and target must have the same shape")
    # Normalize weights exactly like the PyTorch __init__.
    wsum = float(sum(weights))
    if wsum <= 0.0:
        raise ValueError("Sum of weights must be positive")
    w_bce, w_dice = (float(w) / wsum for w in weights)

    n_elems = int(np.prod(pred.shape))
    if use_pallas is None:
        use_pallas = n_elems >= (1 << 20)
    if not use_pallas:
        return _jax_fallback(pred, target, w_bce, w_dice)

    p_item = jnp.dtype(pred.dtype).itemsize
    t_item = jnp.dtype(target.dtype).itemsize
    # Sublane granularity depends on the narrowest element width
    # (f32 -> 8 rows, bf16 -> 16 rows).
    min_sub = max(8, 32 // max(1, min(p_item, t_item)))

    rows_raw = -(-n_elems // _LANE)  # ceil
    cores = _num_tensorcores()
    num_splits = 2 if (cores >= 2 and rows_raw >= 2 * min_sub) else 1

    rows_per_split_needed = -(-rows_raw // num_splits)
    tile_rows = min(_MAX_TILE_ROWS, _round_up(rows_per_split_needed, min_sub))
    tile_rows = _round_up(tile_rows, min_sub)
    steps = -(-rows_per_split_needed // tile_rows)
    rows_padded = num_splits * steps * tile_rows
    padded_n = rows_padded * _LANE
    needs_mask = padded_n != n_elems

    pred_flat = pred.reshape(-1)
    tgt_flat = target.reshape(-1)
    if needs_mask:
        pad = padded_n - n_elems
        pred_flat = jnp.pad(pred_flat, (0, pad))
        tgt_flat = jnp.pad(tgt_flat, (0, pad))
    pred2d = pred_flat.reshape(rows_padded, _LANE)
    tgt2d = tgt_flat.reshape(rows_padded, _LANE)

    in_map = lambda c, j: (c * steps + j, 0)

    # Explicit VMEM budget: double-buffered inputs + 3 single-vreg accumulators
    # + headroom.  Raise past v5e's 16 MiB default; stay well under v7x's
    # 64 MiB per-TC physical.
    in_block_bytes = tile_rows * _LANE * (p_item + t_item)
    vmem_limit = int(min(64 << 20, max(32 << 20, 2 * in_block_bytes + (4 << 20))))

    kernel = _make_partial_sums_kernel(tile_rows, steps, n_elems, needs_mask)

    partials = pl.pallas_call(
        kernel,
        out_shape=jax.ShapeDtypeStruct((num_splits, 8, _LANE), jnp.float32),
        grid_spec=pltpu.PrefetchScalarGridSpec(
            num_scalar_prefetch=0,
            grid=(num_splits, steps),
            in_specs=[
                pl.BlockSpec((tile_rows, _LANE), in_map),
                pl.BlockSpec((tile_rows, _LANE), in_map),
            ],
            out_specs=pl.BlockSpec((1, 8, _LANE), lambda c, j: (c, 0, 0)),
            scratch_shapes=[
                pltpu.VMEM((8, _LANE), jnp.float32),
                pltpu.VMEM((8, _LANE), jnp.float32),
                pltpu.VMEM((8, _LANE), jnp.float32),
            ],
        ),
        compiler_params=pltpu.CompilerParams(
            dimension_semantics=("parallel", "arbitrary"),
            vmem_limit_bytes=vmem_limit,
        ),
    )(pred2d, tgt2d)

    # Tiny scalar epilogue stays in plain JAX (a handful of ops).
    sums = jnp.sum(partials[:, 0, :], axis=0)          # (128,) f32
    bce_mean = sums[0] / float(n_elems)
    dice_coeff = (2.0 * sums[1] + _DICE_SMOOTH) / (sums[2] + _DICE_SMOOTH)
    loss = w_bce * bce_mean + w_dice * (1.0 - dice_coeff)
    return loss.astype(jnp.float32)


def _reference(pred, target, weights=(0.7, 0.3)):
    """Pure-JAX reference matching the PyTorch semantics."""
    wsum = float(sum(weights))
    w_bce, w_dice = (float(w) / wsum for w in weights)
    x = pred.astype(jnp.float32)
    t = target.astype(jnp.float32)
    bce = jnp.mean(jnp.maximum(x, 0.0) - x * t + jnp.log1p(jnp.exp(-jnp.abs(x))))
    p = jax.nn.sigmoid(x)
    dice = 1.0 - (2.0 * jnp.sum(p * t) + _DICE_SMOOTH) / (
        jnp.sum(p) + jnp.sum(t) + _DICE_SMOOTH
    )
    return w_bce * bce + w_dice * dice


if __name__ == "__main__":
    key = jax.random.PRNGKey(0)
    kp, kt, kp2, kt2 = jax.random.split(key, 4)

    # 1) Friendly shape (NCHW: batch=2, channels=4, spatial=16x16).
    pred = jax.random.normal(kp, (2, 4, 16, 16), dtype=jnp.float32)
    target = (
        jax.random.uniform(kt, (2, 4, 16, 16), dtype=jnp.float32) > 0.5
    ).astype(jnp.float32)
    loss = jax.block_until_ready(
        weighted_sum_combinator(pred, target, use_pallas=True)
    )
    ref = jax.block_until_ready(_reference(pred, target))
    np.testing.assert_allclose(np.asarray(loss), np.asarray(ref),
                               rtol=1e-5, atol=1e-5)

    # 2) Non-divisible shape exercising the padded / masked path.
    pred2 = jax.random.normal(kp2, (2, 3, 17, 19), dtype=jnp.float32)
    target2 = (
        jax.random.uniform(kt2, (2, 3, 17, 19), dtype=jnp.float32) > 0.5
    ).astype(jnp.float32)
    loss2 = jax.block_until_ready(
        weighted_sum_combinator(pred2, target2, use_pallas=True)
    )
    ref2 = jax.block_until_ready(_reference(pred2, target2))
    np.testing.assert_allclose(np.asarray(loss2), np.asarray(ref2),
                               rtol=1e-5, atol=1e-5)

    print("KERNEL_OK")
</pallas_src>

<mosaic_0001>
module attributes {stable_mosaic.version = 11 : i64} {
  func.func @kernel(%arg0: i32, %arg1: i32, %arg2: memref<16x128xf32, #tpu.memory_space<vmem>>, %arg3: memref<16x128xf32, #tpu.memory_space<vmem>>, %arg4: memref<1x8x128xf32, #tpu.memory_space<vmem>>, %arg5: memref<8x128xf32, #tpu.memory_space<vmem>>, %arg6: memref<8x128xf32, #tpu.memory_space<vmem>>, %arg7: memref<8x128xf32, #tpu.memory_space<vmem>>) attributes {dimension_semantics = [#tpu.dimension_semantics<parallel>, #tpu.dimension_semantics<arbitrary>], iteration_bounds = array<i64: 1, 1>, scalar_prefetch = 0 : i64, scratch_operands = 3 : i64, tpu.core_type = #tpu.core_type<tc>, window_params = [{transform_indices = @transform_0, window_bounds = array<i64: 16, 128>}, {transform_indices = @transform_1, window_bounds = array<i64: 16, 128>}, {transform_indices = @transform_2, window_bounds = array<i64: 1, 8, 128>}]} {
    %c0_i32 = arith.constant 0 : i32
    %0 = arith.cmpi eq, %arg1, %c0_i32 : i32
    %1 = arith.extui %0 : i1 to i32
    %c0_i32_0 = arith.constant 0 : i32
    %2 = arith.cmpi ne, %1, %c0_i32_0 : i32
    scf.if %2 {
      %cst_26 = arith.constant 0.000000e+00 : f32
      %43 = vector.broadcast %cst_26 : f32 to vector<8x128xf32>
      %c0_27 = arith.constant 0 : index
      %c0_28 = arith.constant 0 : index
      %44 = vector.load %arg5[%c0_27, %c0_28] : memref<8x128xf32, #tpu.memory_space<vmem>>, vector<8x128xf32>
      tpu.vector_store %arg5[%c0_27, %c0_28], %43 {strides = array<i32>} : memref<8x128xf32, #tpu.memory_space<vmem>>, vector<8x128xf32>,
      %cst_29 = arith.constant 0.000000e+00 : f32
      %45 = vector.broadcast %cst_29 : f32 to vector<8x128xf32>
      %c0_30 = arith.constant 0 : index
      %c0_31 = arith.constant 0 : index
      %46 = vector.load %arg6[%c0_30, %c0_31] : memref<8x128xf32, #tpu.memory_space<vmem>>, vector<8x128xf32>
      tpu.vector_store %arg6[%c0_30, %c0_31], %45 {strides = array<i32>} : memref<8x128xf32, #tpu.memory_space<vmem>>, vector<8x128xf32>,
      %cst_32 = arith.constant 0.000000e+00 : f32
      %47 = vector.broadcast %cst_32 : f32 to vector<8x128xf32>
      %c0_33 = arith.constant 0 : index
      %c0_34 = arith.constant 0 : index
      %48 = vector.load %arg7[%c0_33, %c0_34] : memref<8x128xf32, #tpu.memory_space<vmem>>, vector<8x128xf32>
      tpu.vector_store %arg7[%c0_33, %c0_34], %47 {strides = array<i32>} : memref<8x128xf32, #tpu.memory_space<vmem>>, vector<8x128xf32>,
    } else {
    }
    %c0 = arith.constant 0 : index
    %c0_1 = arith.constant 0 : index
    %3 = vector.load %arg2[%c0, %c0_1] : memref<16x128xf32, #tpu.memory_space<vmem>>, vector<16x128xf32>
    %c0_2 = arith.constant 0 : index
    %c0_3 = arith.constant 0 : index
    %4 = vector.load %arg3[%c0_2, %c0_3] : memref<16x128xf32, #tpu.memory_space<vmem>>, vector<16x128xf32>
    %cst = arith.constant 5.000000e-01 : f32
    %5 = vector.broadcast %cst : f32 to vector<16x128xf32>
    %6 = arith.mulf %5, %3 : vector<16x128xf32>
    %7 = math.tanh %6 : vector<16x128xf32>
    %cst_4 = arith.constant 1.000000e+00 : f32
    %8 = vector.broadcast %cst_4 : f32 to vector<16x128xf32>
    %9 = arith.addf %8, %7 : vector<16x128xf32>
    %cst_5 = arith.constant 5.000000e-01 : f32
    %10 = vector.broadcast %cst_5 : f32 to vector<16x128xf32>
    %11 = arith.mulf %10, %9 : vector<16x128xf32>
    %cst_6 = arith.constant 1.000000e+00 : f32
    %12 = vector.broadcast %cst_6 : f32 to vector<16x128xf32>
    %13 = arith.subf %12, %11 : vector<16x128xf32>
    %14 = arith.maximumf %11, %13 : vector<16x128xf32>
    %15 = math.log %14 : vector<16x128xf32>
    %cst_7 = arith.constant 0.000000e+00 : f32
    %16 = vector.broadcast %cst_7 : f32 to vector<16x128xf32>
    %17 = arith.subf %16, %15 : vector<16x128xf32>
    %cst_8 = arith.constant 0.000000e+00 : f32
    %18 = vector.broadcast %cst_8 : f32 to vector<16x128xf32>
    %19 = arith.maximumf %3, %18 : vector<16x128xf32>
    %20 = arith.mulf %3, %4 : vector<16x128xf32>
    %21 = arith.subf %19, %20 : vector<16x128xf32>
    %22 = arith.addf %21, %17 : vector<16x128xf32>
    %23 = arith.mulf %11, %4 : vector<16x128xf32>
    %24 = arith.addf %11, %4 : vector<16x128xf32>
    %c0_9 = arith.constant 0 : index
    %c0_10 = arith.constant 0 : index
    %25 = vector.load %arg5[%c0_9, %c0_10] : memref<8x128xf32, #tpu.memory_space<vmem>>, vector<8x128xf32>
    %26 = vector.shape_cast %22 : vector<16x128xf32> to vector<2x8x128xf32>
    %cst_11 = arith.constant dense<0.000000e+00> : vector<8x128xf32>
    %27 = vector.multi_reduction <add>, %26, %cst_11 [0] : vector<2x8x128xf32> to vector<8x128xf32>
    %28 = arith.addf %25, %27 : vector<8x128xf32>
    %c0_12 = arith.constant 0 : index
    %c0_13 = arith.constant 0 : index
    %29 = vector.load %arg5[%c0_12, %c0_13] : memref<8x128xf32, #tpu.memory_space<vmem>>, vector<8x128xf32>
    tpu.vector_store %arg5[%c0_12, %c0_13], %28 {strides = array<i32>} : memref<8x128xf32, #tpu.memory_space<vmem>>, vector<8x128xf32>,
    %c0_14 = arith.constant 0 : index
    %c0_15 = arith.constant 0 : index
    %30 = vector.load %arg6[%c0_14, %c0_15] : memref<8x128xf32, #tpu.memory_space<vmem>>, vector<8x128xf32>
    %31 = vector.shape_cast %23 : vector<16x128xf32> to vector<2x8x128xf32>
    %cst_16 = arith.constant dense<0.000000e+00> : vector<8x128xf32>
    %32 = vector.multi_reduction <add>, %31, %cst_16 [0] : vector<2x8x128xf32> to vector<8x128xf32>
    %33 = arith.addf %30, %32 : vector<8x128xf32>
    %c0_17 = arith.constant 0 : index
    %c0_18 = arith.constant 0 : index
    %34 = vector.load %arg6[%c0_17, %c0_18] : memref<8x128xf32, #tpu.memory_space<vmem>>, vector<8x128xf32>
    tpu.vector_store %arg6[%c0_17, %c0_18], %33 {strides = array<i32>} : memref<8x128xf32, #tpu.memory_space<vmem>>, vector<8x128xf32>,
    %c0_19 = arith.constant 0 : index
    %c0_20 = arith.constant 0 : index
    %35 = vector.load %arg7[%c0_19, %c0_20] : memref<8x128xf32, #tpu.memory_space<vmem>>, vector<8x128xf32>
    %36 = vector.shape_cast %24 : vector<16x128xf32> to vector<2x8x128xf32>
    %cst_21 = arith.constant dense<0.000000e+00> : vector<8x128xf32>
    %37 = vector.multi_reduction <add>, %36, %cst_21 [0] : vector<2x8x128xf32> to vector<8x128xf32>
    %38 = arith.addf %35, %37 : vector<8x128xf32>
    %c0_22 = arith.constant 0 : index
    %c0_23 = arith.constant 0 : index
    %39 = vector.load %arg7[%c0_22, %c0_23] : memref<8x128xf32, #tpu.memory_space<vmem>>, vector<8x128xf32>
    tpu.vector_store %arg7[%c0_22, %c0_23], %38 {strides = array<i32>} : memref<8x128xf32, #tpu.memory_space<vmem>>, vector<8x128xf32>,
    %c0_i32_24 = arith.constant 0 : i32
    %40 = arith.cmpi eq, %arg1, %c0_i32_24 : i32
    %41 = arith.extui %40 : i1 to i32
    %c0_i32_25 = arith.constant 0 : i32
    %42 = arith.cmpi ne, %41, %c0_i32_25 : i32
    scf.if %42 {
      %c0_26 = arith.constant 0 : index
      %c0_27 = arith.constant 0 : index
      %43 = vector.load %arg5[%c0_26, %c0_27] : memref<8x128xf32, #tpu.memory_space<vmem>>, vector<8x128xf32>
      %44 = vector.shape_cast %43 : vector<8x128xf32> to vector<1x8x128xf32>
      %cst_28 = arith.constant dense<0.000000e+00> : vector<1xf32>
      %45 = vector.multi_reduction <add>, %44, %cst_28 [1, 2] : vector<1x8x128xf32> to vector<1xf32>
      %46 = vector.shape_cast %45 : vector<1xf32> to vector<1x1x1xf32>
      %47 = vector.extract %46[0, 0, 0] : f32 from vector<1x1x1xf32>
      %c0_29 = arith.constant 0 : index
      %c0_30 = arith.constant 0 : index
      %48 = vector.load %arg6[%c0_29, %c0_30] : memref<8x128xf32, #tpu.memory_space<vmem>>, vector<8x128xf32>
      %49 = vector.shape_cast %48 : vector<8x128xf32> to vector<1x8x128xf32>
      %cst_31 = arith.constant dense<0.000000e+00> : vector<1xf32>
      %50 = vector.multi_reduction <add>, %49, %cst_31 [1, 2] : vector<1x8x128xf32> to vector<1xf32>
      %51 = vector.shape_cast %50 : vector<1xf32> to vector<1x1x1xf32>
      %52 = vector.extract %51[0, 0, 0] : f32 from vector<1x1x1xf32>
      %c0_32 = arith.constant 0 : index
      %c0_33 = arith.constant 0 : index
      %53 = vector.load %arg7[%c0_32, %c0_33] : memref<8x128xf32, #tpu.memory_space<vmem>>, vector<8x128xf32>
      %54 = vector.shape_cast %53 : vector<8x128xf32> to vector<1x8x128xf32>
      %cst_34 = arith.constant dense<0.000000e+00> : vector<1xf32>
      %55 = vector.multi_reduction <add>, %54, %cst_34 [1, 2] : vector<1x8x128xf32> to vector<1xf32>
      %56 = vector.shape_cast %55 : vector<1xf32> to vector<1x1x1xf32>
      %57 = vector.extract %56[0, 0, 0] : f32 from vector<1x1x1xf32>
      %58 = tpu.iota {dimensions = array<i32: 2>} : vector<1x8x128xi32>
      %c0_i32_35 = arith.constant 0 : i32
      %59 = vector.broadcast %c0_i32_35 : i32 to vector<1x8x128xi32>
      %60 = arith.cmpi eq, %58, %59 : vector<1x8x128xi32>
      %c1_i32 = arith.constant 1 : i32
      %61 = vector.broadcast %c1_i32 : i32 to vector<1x8x128xi32>
      %62 = arith.cmpi eq, %58, %61 : vector<1x8x128xi32>
      %c2_i32 = arith.constant 2 : i32
      %63 = vector.broadcast %c2_i32 : i32 to vector<1x8x128xi32>
      %64 = arith.cmpi eq, %58, %63 : vector<1x8x128xi32>
      %cst_36 = arith.constant 0.000000e+00 : f32
      %65 = vector.broadcast %57 : f32 to vector<1x8x128xf32>
      %66 = vector.broadcast %cst_36 : f32 to vector<1x8x128xf32>
      %67 = arith.select %64, %65, %66 : vector<1x8x128xi1>, vector<1x8x128xf32>
      %68 = vector.broadcast %52 : f32 to vector<1x8x128xf32>
      %69 = arith.select %62, %68, %67 : vector<1x8x128xi1>, vector<1x8x128xf32>
      %70 = vector.broadcast %47 : f32 to vector<1x8x128xf32>
      %71 = arith.select %60, %70, %69 : vector<1x8x128xi1>, vector<1x8x128xf32>
      %c0_37 = arith.constant 0 : index
      %c0_38 = arith.constant 0 : index
      %c0_39 = arith.constant 0 : index
      %72 = vector.load %arg4[%c0_37, %c0_38, %c0_39] : memref<1x8x128xf32, #tpu.memory_space<vmem>>, vector<1x8x128xf32>
      tpu.vector_store %arg4[%c0_37, %c0_38, %c0_39], %71 {strides = array<i32>} : memref<1x8x128xf32, #tpu.memory_space<vmem>>, vector<1x8x128xf32>,
    } else {
    }
    return
  }
  func.func @transform_0(%arg0: i32, %arg1: i32) -> (i32, i32) {
    %c1_i32 = arith.constant 1 : i32
    %0 = arith.muli %arg0, %c1_i32 : i32
    %1 = arith.addi %0, %arg1 : i32
    %c0_i32 = arith.constant 0 : i32
    %c0_i32_0 = arith.constant 0 : i32
    return %1, %c0_i32 : i32, i32
  }
  func.func @transform_1(%arg0: i32, %arg1: i32) -> (i32, i32) {
    %c1_i32 = arith.constant 1 : i32
    %0 = arith.muli %arg0, %c1_i32 : i32
    %1 = arith.addi %0, %arg1 : i32
    %c0_i32 = arith.constant 0 : i32
    %c0_i32_0 = arith.constant 0 : i32
    return %1, %c0_i32 : i32, i32
  }
  func.func @transform_2(%arg0: i32, %arg1: i32) -> (i32, i32, i32) {
    %c0_i32 = arith.constant 0 : i32
    %c0_i32_0 = arith.constant 0 : i32
    %c0_i32_1 = arith.constant 0 : i32
    return %arg0, %c0_i32, %c0_i32_0 : i32, i32, i32
  }
}

</mosaic_0001>

<bundles_post_ra>
// kernel: tpu_custom_call.1
= control target key start
LH: loop header
LB: loop body
LE: loop exit
PB: predicated region body
PF: predicated region fallthrough
CT: control target
= control target key end

     0   :  { %7 = vsyncpa [#allocation6], 0  ;;  %s313_s0 = inlined_call_operand.hbm [shape: f32[16,128], index: 0, kind: input, shape index: {}]   ;;  %s314_s1 = inlined_call_operand.hbm [shape: f32[16,128], index: 1, kind: input, shape index: {}]   ;;  %s315_s2 = inlined_call_operand.hbm [shape: f32[1,8,128], index: 2, kind: output, shape index: {}]  }
   0x1   :  { %8 = vsyncpa [#allocation9], 0 }
   0x2   :  { %9 = vsyncpa [#allocation7], 0  ;;  %s257_s9 = smov [#allocation5]   ;;  %s185_s13 = scalar_lea.hbm %s313_s0, 256 }
   0x3   :  { %s19_s10 = sshll.u32 %s257_s9, 4  ;;  %p186_p0 = scmp.ne.s32.totalorder %s313_s0, %s185_s13  ;;  %s20_s10 = int_to_ptr.vmem [resolvable:$true] %s19_s10 }
   0x4   :  { %p189_p1 = scmp.lt.u32.totalorder %s185_s13, %s313_s0 }
   0x6   :  { %p191_p2 = pnand %p189_p1, %p186_p0 }
   0x8   :  { %194 = shalt.err (!%p191_p2)
}
   0x9   :  { %s195_s18 = scalar_lea.vmem %s20_s10, 256  ;;  %p200_p4 = scmp.lt.s32.totalorder %s20_s10, %s20_s10 }
   0xa   :  { %p196_p3 = scmp.ne.s32.totalorder %s20_s10, %s195_s18  ;;  %p201_p5 = scmp.lt.s32.totalorder %s195_s18, %s195_s18 }
   0xc   :  { %p202_p6 = por %p201_p5, %p200_p4 }
   0xe   :  { %p203_p7 = pnand %p202_p6, %p196_p3 }
  0x10   :  { %206 = shalt.err (!%p203_p7)
}
  0x11   :  { %s258_s19 = smov 128   ;;  %s259_s20 = smov 8  }
  0x12   :  { %25 = dma.hbm_to_vmem [thread:$0]  %s313_s0, 256, %s20_s10, [#allocation6], %s258_s19, %s258_s19, %s259_s20  }
  0x13   :  { %s260_s23 = smov [#allocation8]   ;;  %s207_s27 = scalar_lea.hbm %s314_s1, 256 }
  0x14   :  { %s35_s24 = sshll.u32 %s260_s23, 4  ;;  %p208_p8 = scmp.ne.s32.totalorder %s314_s1, %s207_s27  ;;  %s36_s24 = int_to_ptr.vmem [resolvable:$true] %s35_s24 }
  0x15   :  { %p211_p9 = scmp.lt.u32.totalorder %s207_s27, %s314_s1 }
  0x17   :  { %p213_p10 = pnand %p211_p9, %p208_p8 }
  0x19   :  { %216 = shalt.err (!%p213_p10)
}
  0x1a   :  { %s217_s4 = scalar_lea.vmem %s36_s24, 256  ;;  %p222_p12 = scmp.lt.s32.totalorder %s36_s24, %s36_s24 }
  0x1b   :  { %p218_p11 = scmp.ne.s32.totalorder %s36_s24, %s217_s4  ;;  %p223_p13 = scmp.lt.s32.totalorder %s217_s4, %s217_s4 }
  0x1d   :  { %p224_p0 = por %p223_p13, %p222_p12 }
  0x1f   :  { %p225_p1 = pnand %p224_p0, %p218_p11 }
  0x21   :  { %228 = shalt.err (!%p225_p1)
}
  0x22   :  { %41 = dma.hbm_to_vmem [thread:$0]  %s314_s1, 256, %s36_s24, [#allocation9], %s258_s19, %s258_s19, %s259_s20  }
  0x23   :  { %251 = dma.done.wait [#allocation6], 256  }
  0x24   :  { %252 = vsyncadd [#allocation6], 4294967040 }
  0x25   :  { %253 = dma.done.wait [#allocation9], 256  }
  0x26   :  { %254 = vsyncadd [#allocation9], 4294967040  ;;  %v59_v0 = vld [vmem:[#allocation5] sm:$0xff]  ;;  %v60_v1 = vld [vmem:[#allocation5 + $0x8] sm:$0xff]  ;;  %v138_v58 = vlaneseq  ;;  %s261_s8 = smov [#allocation10]  }
  0x27   :  { %v63_v2 = vmul.f32 0.5, %v59_v0  ;;  %v64_v3 = vmul.f32 0.5, %v60_v1  ;;  %v61_v9 = vld [vmem:[#allocation8] sm:$0xff]  ;;  %v62_v11 = vld [vmem:[#allocation8 + $0x8] sm:$0xff]  ;;  %v81_v19 = vmax.f32 %v59_v0, 0.0  ;;  %v82_v21 = vmax.f32 %v60_v1, 0.0 }
  0x28   :  { %v83_v20 = vmul.f32 %v61_v9, %v59_v0  ;;  %v84_v22 = vmul.f32 %v62_v11, %v60_v1  ;;  %v139_v59 = vand.u32 127, %v138_v58  ;;  %s156_s9 = sshll.u32 %s261_s8, 4  ;;  %s157_s9 = int_to_ptr.vmem [resolvable:$true] %s156_s9 }
  0x29   :  { %177 = vtanh.f32 %v63_v2  ;;  %s229_s10 = scalar_lea.vmem %s157_s9, 128  ;;  %p234_p3 = scmp.lt.s32.totalorder %s157_s9, %s157_s9 }
  0x2a   :  { %179 = vtanh.f32 %v64_v3  ;;  %v85_v26 = vsub.f32 %v81_v19, %v83_v20  ;;  %v86_v28 = vsub.f32 %v82_v21, %v84_v22  ;;  %vm142_vm0 = vcmp.eq.s32.totalorder %v139_v59, 2  ;;  %p230_p2 = scmp.ne.s32.totalorder %s157_s9, %s229_s10  ;;  %p235_p4 = scmp.lt.s32.totalorder %s229_s10, %s229_s10 }
  0x2b   :  { %vm141_vm1 = vcmp.eq.s32.totalorder %v139_v59, 1  ;;  %vm140_vm2 = vcmp.eq.s32.totalorder %v139_v59, 0 }
  0x2c   :  { %p236_p5 = por %p235_p4, %p234_p3 }
  0x2e   :  { %p237_p6 = pnand %p236_p5, %p230_p2 }
  0x33   :  { %v178_v4 = vpop.eup %177 }
  0x34   :  { %v180_v5 = vpop.eup %179  ;;  %v67_v6 = vadd.f32 1.0, %v178_v4 }
  0x35   :  { %v68_v7 = vadd.f32 1.0, %v180_v5 }
  0x36   :  { %v69_v8 = vmul.f32 0.5, %v67_v6 }
  0x37   :  { %v70_v10 = vmul.f32 0.5, %v68_v7 }
  0x38   :  { %v91_v12 = vadd.f32 %v69_v8, %v61_v9  ;;  %v71_v13 = vsub.f32 1.0, %v69_v8  ;;  %v89_v33 = vmul.f32 %v69_v8, %v61_v9 }
  0x39   :  { %v92_v14 = vadd.f32 %v70_v10, %v62_v11  ;;  %v72_v15 = vsub.f32 1.0, %v70_v10  ;;  %v90_v34 = vmul.f32 %v70_v10, %v62_v11 }
  0x3a   :  { %v73_v16 = vmax.f32 %v69_v8, %v71_v13 }
  0x3b   :  { %v102_v17 = vadd.f32 %v92_v14, %v91_v12  ;;  %v74_v18 = vmax.f32 %v70_v10, %v72_v15  ;;  %v98_v36 = vadd.f32 %v90_v34, %v89_v33 }
  0x3c   :  { %181 = vlog2.f32 %v73_v16 }
  0x3d   :  { %129 = vadd.xlane.f32.xlu1 %v102_v17  ;;  %183 = vlog2.f32 %v74_v18 }
  0x46   :  { %v182_v23 = vpop.eup %181 }
  0x47   :  { %v184_v24 = vpop.eup %183  ;;  %v76_v25 = vmul.f32 0.6931472, %v182_v23 }
  0x48   :  { %v78_v27 = vmul.f32 0.6931472, %v184_v24 }
  0x49   :  { %v79_v29 = vsub.f32 0.0, %v76_v25 }
  0x4a   :  { %v80_v30 = vsub.f32 0.0, %v78_v27 }
  0x4b   :  { %v87_v31 = vadd.f32 %v85_v26, %v79_v29 }
  0x4c   :  { %v88_v32 = vadd.f32 %v86_v28, %v80_v30 }
  0x4e   :  { %v94_v35 = vadd.f32 %v88_v32, %v87_v31 }
  0x50   :  { %109 = vadd.xlane.f32.xlu0 %v94_v35 }
  0x54   :  { %119 = vadd.xlane.f32.xlu0 %v98_v36 }
  0xca   :  { %v130_v37 = vpop.xlane.xlu1 %129 }
  0xcb   :  { %v131_v38 = vrot.slane %v130_v37, 4 }
  0xcd   :  { %v132_v39 = vadd.f32 %v131_v38, %v130_v37 }
  0xcf   :  { %v133_v43 = vrot.slane %v132_v39, 2 }
  0xd1   :  { %v134_v49 = vadd.f32 %v133_v43, %v132_v39 }
  0xd3   :  { %v135_v54 = vrot.slane %v134_v49, 1 }
  0xd5   :  { %v136_v57 = vadd.f32 %v135_v54, %v134_v49 }
  0xdd   :  { %v110_v40 = vpop.xlane.xlu0 %109 }
  0xde   :  { %v111_v41 = vrot.slane %v110_v40, 4 }
  0xe0   :  { %v112_v42 = vadd.f32 %v111_v41, %v110_v40 }
  0xe1   :  { %v120_v44 = vpop.xlane.xlu0 %119 }
  0xe2   :  { %v113_v45 = vrot.slane %v112_v42, 2  ;;  %v121_v46 = vrot.slane %v120_v44, 4 }
  0xe4   :  { %v122_v47 = vadd.f32 %v121_v46, %v120_v44  ;;  %v114_v48 = vadd.f32 %v113_v45, %v112_v42 }
  0xe6   :  { %v123_v50 = vrot.slane %v122_v47, 2  ;;  %v115_v51 = vrot.slane %v114_v48, 1 }
  0xe8   :  { %v124_v52 = vadd.f32 %v123_v50, %v122_v47  ;;  %v116_v53 = vadd.f32 %v115_v51, %v114_v48 }
  0xea   :  { %166 = vpush %v116_v53  ;;  %v125_v55 = vrot.slane %v124_v52, 1 }
  0xec   :  { %v126_v56 = vadd.f32 %v125_v55, %v124_v52 }
  0xee   :  { %168 = vpush %v126_v56 }
  0xef   :  { %170 = vpush %v136_v57 }
 0x11b   :  { %s167_s1 = spop %166 }
 0x11c   :  { %v147_v63 = vstv %s167_s1 }
 0x11f   :  { %s169_s6 = spop %168 }
 0x120   :  { %v145_v60 = vstv %s169_s6  ;;  %s171_s7 = spop %170 }
 0x121   :  { %v143_v61 = vstv %s171_s7 }
 0x122   :  { %v144_v62 = vsel %vm142_vm0, %v143_v61, 0.0 }
 0x123   :  { %v146_v0 = vsel %vm141_vm1, %v145_v60, %v144_v62 }
 0x124   :  { %v148_v1 = vsel %vm140_vm2, %v147_v63, %v146_v0 }
 0x125   :  { %149 = vst [vmem:[#allocation10] sm:$0xff] %v148_v1 }
 0x126   :  { %240 = shalt.err (!%p237_p6)
}
 0x127   :  { %s241_s13 = scalar_lea.hbm %s315_s2, 128 }
 0x128   :  { %p242_p7 = scmp.ne.s32.totalorder %s315_s2, %s241_s13  ;;  %p245_p8 = scmp.lt.u32.totalorder %s241_s13, %s315_s2 }
 0x12a   :  { %p247_p9 = pnand %p245_p8, %p242_p7 }
 0x12c   :  { %250 = shalt.err (!%p247_p9)
}
 0x12d   :  { %159 = dma.vmem_to_hbm [thread:$0]  %s157_s9, 128, %s315_s2, [#allocation7]  }
 0x12e   :  { %255 = dma.done.wait [#allocation7], 128  }
 0x12f   :  { %256 = vsyncadd [#allocation7], 4294967168 }
 0x130   :  { %163 = vsyncpa [#allocation6], 1 }
 0x131   :  { %164 = vsyncpa [#allocation9], 1 }
 0x132   :  { %165 = vsyncpa [#allocation7], 1 }

</bundles_post_ra>
